<compile_context>
chip_gen: v7x
topology: tpu7x:2x2x1
jax: 0.10.0
libtpu: 0.0.40
codegen_flags: <defaults>
</compile_context>

<pallas_src>
import math
from functools import partial

import jax
import jax.numpy as jnp
from jax import lax
from jax.experimental import pallas as pl
from jax.experimental.pallas import tpu as pltpu

# ---- module configuration (consistent with the PyTorch __init__) ----
D_MODEL = 32
NHEAD = 4
DIM_FF = 64
SEQ = 8
BATCH = 2
HEAD_DIM = D_MODEL // NHEAD


def transformer_kernel(x_ref, w_ref, b_ref, o_ref, *, batch, nhead, dim_ff):
    """Whole problem in one shot.

    x_ref : (B*S, D) rows interleaved as r = s*B + b (i.e. src.reshape(S*B, D))
    w_ref : (2*D + F, 4*D) packed, pre-transposed weight slab
    b_ref : (2, 4*D) packed bias slab
    """
    x = x_ref[...]                                # (N, D), N = B*S
    N, D = x.shape
    hd = D // nhead
    f = dim_ff

    # ---- fused QKV in-projection (weights pre-transposed, q pre-scaled) ----
    qkv = jnp.dot(x, w_ref[0:D, 0:3 * D],
                  preferred_element_type=jnp.float32) + b_ref[0:1, 0:3 * D]
    q = qkv[:, 0:D]
    k = qkv[:, D:2 * D]
    v = qkv[:, 2 * D:3 * D]

    # ---- batch-interleave mask: row r belongs to batch (r % batch) ----
    ri = lax.broadcasted_iota(jnp.int32, (N, N), 0)
    ci = lax.broadcasted_iota(jnp.int32, (N, N), 1)
    same_batch = (ri % batch) == (ci % batch)
    neg_big = jnp.float32(-1e30)                  # exp(neg_big - max) == 0 exactly

    # ---- per-head attention over BOTH batch elements at once ----
    # Heads are independent tiles; no serial accumulation chain.  The four
    # (N, hd) outputs are lane-concatenated and hit W_o with a single matmul.
    head_outs = []
    for h in range(nhead):
        lo, hi = h * hd, (h + 1) * hd
        # q_h @ k_h^T without an explicit transpose (contract last dims).
        s = lax.dot_general(q[:, lo:hi], k[:, lo:hi],
                            (((1,), (1,)), ((), ())),
                            preferred_element_type=jnp.float32)       # (N, N)
        s = jnp.where(same_batch, s, neg_big)      # mask cross-batch pairs
        s = s - jnp.max(s, axis=-1, keepdims=True)
        p = jnp.exp(s)                             # masked entries -> exactly 0
        p = p * pl.reciprocal(jnp.sum(p, axis=-1, keepdims=True), approx=True)
        head_outs.append(jnp.dot(p, v[:, lo:hi],
                                 preferred_element_type=jnp.float32))  # (N, hd)

    attn = jnp.concatenate(head_outs, axis=-1)     # (N, D) lane-concat
    attn = jnp.dot(attn, w_ref[0:D, 3 * D:4 * D],
                   preferred_element_type=jnp.float32) + b_ref[0:1, 3 * D:4 * D]

    # ---- feed-forward: linear2(relu(linear1(attn))) ----
    h1 = jnp.dot(attn, w_ref[D:2 * D, 0:f],
                 preferred_element_type=jnp.float32) + b_ref[1:2, 0:f]
    h1 = jnp.maximum(h1, 0.0)
    y = jnp.dot(h1, w_ref[2 * D:2 * D + f, 0:D],
                preferred_element_type=jnp.float32) + b_ref[1:2, f:f + D]

    o_ref[...] = y.astype(o_ref.dtype)


def pack_params(p):
    """Pack all weights into one pre-transposed (2D+F, 4D) slab and a (2, 4D) bias slab.

    Row layout of the weight slab (D=32, F=64 -> 128x128):
      [0:D,      0:3D]  = [Wq^T*scale | Wk^T | Wv^T]   (fused QKV, q-scale folded)
      [0:D,      3D:4D] = Wo^T
      [D:2D,     0:F ]  = W1^T
      [2D:2D+F,  0:D ]  = W2^T
    """
    D, F = D_MODEL, DIM_FF
    scale = 1.0 / math.sqrt(HEAD_DIM)
    rows, cols = 2 * D + F, 4 * D
    assert cols >= F + D, "bias packing assumes 4*d_model >= dim_ff + d_model"

    w = jnp.zeros((rows, cols), jnp.float32)
    w = w.at[0:D, 0:D].set(p['wq'].T * scale)
    w = w.at[0:D, D:2 * D].set(p['wk'].T)
    w = w.at[0:D, 2 * D:3 * D].set(p['wv'].T)
    w = w.at[0:D, 3 * D:4 * D].set(p['wo'].T)
    w = w.at[D:2 * D, 0:F].set(p['w1'].T)
    w = w.at[2 * D:2 * D + F, 0:D].set(p['w2'].T)

    b = jnp.zeros((2, cols), jnp.float32)
    b = b.at[0:1, 0:D].set(p['bq'] * scale)        # scale folds into bias too
    b = b.at[0:1, D:2 * D].set(p['bk'])
    b = b.at[0:1, 2 * D:3 * D].set(p['bv'])
    b = b.at[0:1, 3 * D:4 * D].set(p['bo'])
    b = b.at[1:2, 0:F].set(p['b1'])
    b = b.at[1:2, F:F + D].set(p['b2'])
    return w, b


def custom_transformer(src, params):
    """src: (SEQ, BATCH, D_MODEL) float32 — same layout as the PyTorch module."""
    S, B, D = src.shape
    N = S * B
    x2d = src.reshape(N, D)                        # free contiguous reshape (no transpose)
    w_slab, b_slab = pack_params(params)

    # Tiny, honest cost estimate so XLA doesn't treat the call as heavy.
    hd = D // NHEAD
    flops = (2 * N * D * 3 * D                     # fused QKV
             + NHEAD * (2 * N * hd * N)            # scores
             + NHEAD * (2 * N * N * hd)            # PV
             + 2 * N * D * D                       # W_o
             + 2 * N * D * DIM_FF                  # linear1
             + 2 * N * DIM_FF * D)                 # linear2
    transcendentals = NHEAD * N * N + NHEAD * N    # exp + approx reciprocal
    bytes_accessed = 4 * (x2d.size + w_slab.size + b_slab.size + N * D)

    out2d = pl.pallas_call(
        partial(transformer_kernel, batch=B, nhead=NHEAD, dim_ff=DIM_FF),
        out_shape=jax.ShapeDtypeStruct((N, D), jnp.float32),
        # Single invocation (no grid): whole problem + all weights (<300 KiB)
        # live in VMEM; no pipelining / double-buffering machinery needed.
        in_specs=[pl.BlockSpec(memory_space=pltpu.MemorySpace.VMEM)] * 3,
        out_specs=pl.BlockSpec(memory_space=pltpu.MemorySpace.VMEM),
        cost_estimate=pl.CostEstimate(flops=flops,
                                      transcendentals=transcendentals,
                                      bytes_accessed=bytes_accessed),
    )(x2d, w_slab, b_slab)

    return out2d.reshape(S, B, D)                  # free reshape back


def init_params(key):
    """Deterministic synthetic parameters with PyTorch nn.Linear/MHA shapes."""
    ks = jax.random.split(key, 8)
    sc = 0.1
    return {
        'wq': sc * jax.random.normal(ks[0], (D_MODEL, D_MODEL), jnp.float32),
        'wk': sc * jax.random.normal(ks[1], (D_MODEL, D_MODEL), jnp.float32),
        'wv': sc * jax.random.normal(ks[2], (D_MODEL, D_MODEL), jnp.float32),
        'bq': sc * jax.random.normal(ks[3], (1, D_MODEL), jnp.float32),
        'bk': jnp.zeros((1, D_MODEL), jnp.float32),
        'bv': sc * jax.random.normal(ks[4], (1, D_MODEL), jnp.float32),
        'wo': sc * jax.random.normal(ks[5], (D_MODEL, D_MODEL), jnp.float32),
        'bo': jnp.zeros((1, D_MODEL), jnp.float32),
        'w1': sc * jax.random.normal(ks[6], (DIM_FF, D_MODEL), jnp.float32),
        'b1': jnp.full((1, DIM_FF), 0.01, jnp.float32),
        'w2': sc * jax.random.normal(ks[7], (D_MODEL, DIM_FF), jnp.float32),
        'b2': jnp.full((1, D_MODEL), -0.01, jnp.float32),
    }


def ref_forward(src, p):
    """Pure-JAX reference matching PyTorch semantics (for verification)."""
    S, B, D = src.shape
    x = jnp.transpose(src, (1, 0, 2))
    q = x @ p['wq'].T + p['bq']
    k = x @ p['wk'].T + p['bk']
    v = x @ p['wv'].T + p['bv']
    hd = D // NHEAD
    qh = q.reshape(B, S, NHEAD, hd).transpose(0, 2, 1, 3) * (1.0 / math.sqrt(hd))
    kh = k.reshape(B, S, NHEAD, hd).transpose(0, 2, 1, 3)
    vh = v.reshape(B, S, NHEAD, hd).transpose(0, 2, 1, 3)
    s = qh @ kh.transpose(0, 1, 3, 2)
    pw = jax.nn.softmax(s, axis=-1)
    o = (pw @ vh).transpose(0, 2, 1, 3).reshape(B, S, D)
    o = o @ p['wo'].T + p['bo']
    h = jnp.maximum(o @ p['w1'].T + p['b1'], 0.0)
    y = h @ p['w2'].T + p['b2']
    return jnp.transpose(y, (1, 0, 2))


if __name__ == "__main__":
    key = jax.random.PRNGKey(0)
    k_x, k_p = jax.random.split(key)
    src = jax.random.normal(k_x, (SEQ, BATCH, D_MODEL), jnp.float32)
    params = init_params(k_p)

    out = jax.block_until_ready(custom_transformer(src, params))
    ref = ref_forward(src, params)

    assert out.shape == (SEQ, BATCH, D_MODEL)
    err = jnp.max(jnp.abs(out - ref))
    # tolerance accounts for the EUP approximate reciprocal in the softmax
    assert err < 2e-3, f"max abs diff {err}"

    print("KERNEL_OK")
</pallas_src>

<mosaic_0001>
module attributes {stable_mosaic.version = 11 : i64} {
  func.func @transformer_kernel(%arg0: memref<16x32xf32, #tpu.memory_space<vmem>>, %arg1: memref<128x128xf32, #tpu.memory_space<vmem>>, %arg2: memref<2x128xf32, #tpu.memory_space<vmem>>, %arg3: memref<16x32xf32, #tpu.memory_space<vmem>>) attributes {dimension_semantics = [], scalar_prefetch = 0 : i64, scratch_operands = 0 : i64, tpu.core_type = #tpu.core_type<tc>} {
    %c0 = arith.constant 0 : index
    %c0_0 = arith.constant 0 : index
    %0 = vector.load %arg0[%c0, %c0_0] : memref<16x32xf32, #tpu.memory_space<vmem>>, vector<16x32xf32>
    %c0_1 = arith.constant 0 : index
    %c0_2 = arith.constant 0 : index
    %1 = vector.load %arg1[%c0_1, %c0_2] : memref<128x128xf32, #tpu.memory_space<vmem>>, vector<32x96xf32>
    %cst = arith.constant dense<0.000000e+00> : vector<16x96xf32>
    %2 = tpu.matmul %0, %1, %cst {dimension_numbers = #tpu.dot_dimension_numbers<[1], [0], [0], [1], [0, 0, 1, 1], [], []>} : vector<16x32xf32>, vector<32x96xf32>, vector<16x96xf32> -> vector<16x96xf32>
    %c0_3 = arith.constant 0 : index
    %c0_4 = arith.constant 0 : index
    %3 = vector.load %arg2[%c0_3, %c0_4] : memref<2x128xf32, #tpu.memory_space<vmem>>, vector<1x96xf32>
    %4 = vector.broadcast %3 : vector<1x96xf32> to vector<16x96xf32>
    %5 = arith.addf %2, %4 : vector<16x96xf32>
    %6 = vector.extract_strided_slice %5 {offsets = [0, 0], sizes = [16, 32], strides = [1, 1]} : vector<16x96xf32> to vector<16x32xf32>
    %7 = vector.extract_strided_slice %5 {offsets = [0, 32], sizes = [16, 32], strides = [1, 1]} : vector<16x96xf32> to vector<16x32xf32>
    %8 = vector.extract_strided_slice %5 {offsets = [0, 64], sizes = [16, 32], strides = [1, 1]} : vector<16x96xf32> to vector<16x32xf32>
    %9 = tpu.iota {dimensions = array<i32: 0>} : vector<16x16xi32>
    %10 = tpu.iota {dimensions = array<i32: 1>} : vector<16x16xi32>
    %c2_i32 = arith.constant 2 : i32
    %c0_i32 = arith.constant 0 : i32
    %11 = arith.cmpi eq, %c2_i32, %c0_i32 : i32
    %c1_i32 = arith.constant 1 : i32
    %12 = arith.select %11, %c1_i32, %c2_i32 : i32
    %13 = vector.broadcast %12 : i32 to vector<16x16xi32>
    %14 = arith.remsi %9, %13 : vector<16x16xi32>
    %c0_i32_5 = arith.constant 0 : i32
    %15 = vector.broadcast %c0_i32_5 : i32 to vector<16x16xi32>
    %16 = arith.cmpi ne, %14, %15 : vector<16x16xi32>
    %c0_i32_6 = arith.constant 0 : i32
    %17 = vector.broadcast %c0_i32_6 : i32 to vector<16x16xi32>
    %18 = arith.cmpi slt, %14, %17 : vector<16x16xi32>
    %c0_i32_7 = arith.constant 0 : i32
    %19 = arith.cmpi slt, %12, %c0_i32_7 : i32
    %20 = vector.broadcast %19 : i1 to vector<16x16xi1>
    %21 = vector.broadcast %20 : vector<16x16xi1> to vector<16x16xi1>
    %22 = arith.xori %18, %21 : vector<16x16xi1>
    %23 = arith.andi %22, %16 : vector<16x16xi1>
    %24 = vector.broadcast %12 : i32 to vector<16x16xi32>
    %25 = arith.addi %14, %24 : vector<16x16xi32>
    %26 = arith.select %23, %25, %14 : vector<16x16xi1>, vector<16x16xi32>
    %c2_i32_8 = arith.constant 2 : i32
    %c0_i32_9 = arith.constant 0 : i32
    %27 = arith.cmpi eq, %c2_i32_8, %c0_i32_9 : i32
    %c1_i32_10 = arith.constant 1 : i32
    %28 = arith.select %27, %c1_i32_10, %c2_i32_8 : i32
    %29 = vector.broadcast %28 : i32 to vector<16x16xi32>
    %30 = arith.remsi %10, %29 : vector<16x16xi32>
    %c0_i32_11 = arith.constant 0 : i32
    %31 = vector.broadcast %c0_i32_11 : i32 to vector<16x16xi32>
    %32 = arith.cmpi ne, %30, %31 : vector<16x16xi32>
    %c0_i32_12 = arith.constant 0 : i32
    %33 = vector.broadcast %c0_i32_12 : i32 to vector<16x16xi32>
    %34 = arith.cmpi slt, %30, %33 : vector<16x16xi32>
    %c0_i32_13 = arith.constant 0 : i32
    %35 = arith.cmpi slt, %28, %c0_i32_13 : i32
    %36 = vector.broadcast %35 : i1 to vector<16x16xi1>
    %37 = vector.broadcast %36 : vector<16x16xi1> to vector<16x16xi1>
    %38 = arith.xori %34, %37 : vector<16x16xi1>
    %39 = arith.andi %38, %32 : vector<16x16xi1>
    %40 = vector.broadcast %28 : i32 to vector<16x16xi32>
    %41 = arith.addi %30, %40 : vector<16x16xi32>
    %42 = arith.select %39, %41, %30 : vector<16x16xi1>, vector<16x16xi32>
    %43 = arith.cmpi eq, %26, %42 : vector<16x16xi32>
    %44 = vector.extract_strided_slice %6 {offsets = [0, 0], sizes = [16, 8], strides = [1, 1]} : vector<16x32xf32> to vector<16x8xf32>
    %45 = vector.extract_strided_slice %7 {offsets = [0, 0], sizes = [16, 8], strides = [1, 1]} : vector<16x32xf32> to vector<16x8xf32>
    %cst_14 = arith.constant dense<0.000000e+00> : vector<16x16xf32>
    %46 = tpu.matmul %44, %45, %cst_14 {dimension_numbers = #tpu.dot_dimension_numbers<[1], [1], [0], [0], [0, 0, 1, 0], [], []>} : vector<16x8xf32>, vector<16x8xf32>, vector<16x16xf32> -> vector<16x16xf32>
    %cst_15 = arith.constant -1.000000e+30 : f32
    %47 = vector.broadcast %cst_15 : f32 to vector<16x16xf32>
    %48 = arith.select %43, %46, %47 : vector<16x16xi1>, vector<16x16xf32>
    %cst_16 = arith.constant dense<0xFF800000> : vector<16xf32>
    %49 = vector.multi_reduction <maximumf>, %48, %cst_16 [1] : vector<16x16xf32> to vector<16xf32>
    %50 = vector.shape_cast %49 : vector<16xf32> to vector<16x1xf32>
    %51 = vector.broadcast %50 : vector<16x1xf32> to vector<16x16xf32>
    %52 = arith.subf %48, %51 : vector<16x16xf32>
    %53 = math.exp %52 : vector<16x16xf32>
    %cst_17 = arith.constant dense<0.000000e+00> : vector<16xf32>
    %54 = vector.multi_reduction <add>, %53, %cst_17 [1] : vector<16x16xf32> to vector<16xf32>
    %55 = vector.shape_cast %54 : vector<16xf32> to vector<16x1xf32>
    %56 = tpu.reciprocal %55 {approx = true} : vector<16x1xf32> -> vector<16x1xf32>
    %57 = vector.broadcast %56 : vector<16x1xf32> to vector<16x16xf32>
    %58 = arith.mulf %53, %57 : vector<16x16xf32>
    %59 = vector.extract_strided_slice %8 {offsets = [0, 0], sizes = [16, 8], strides = [1, 1]} : vector<16x32xf32> to vector<16x8xf32>
    %cst_18 = arith.constant dense<0.000000e+00> : vector<16x8xf32>
    %60 = tpu.matmul %58, %59, %cst_18 {dimension_numbers = #tpu.dot_dimension_numbers<[1], [0], [0], [1], [0, 0, 1, 1], [], []>} : vector<16x16xf32>, vector<16x8xf32>, vector<16x8xf32> -> vector<16x8xf32>
    %61 = vector.extract_strided_slice %6 {offsets = [0, 8], sizes = [16, 8], strides = [1, 1]} : vector<16x32xf32> to vector<16x8xf32>
    %62 = vector.extract_strided_slice %7 {offsets = [0, 8], sizes = [16, 8], strides = [1, 1]} : vector<16x32xf32> to vector<16x8xf32>
    %cst_19 = arith.constant dense<0.000000e+00> : vector<16x16xf32>
    %63 = tpu.matmul %61, %62, %cst_19 {dimension_numbers = #tpu.dot_dimension_numbers<[1], [1], [0], [0], [0, 0, 1, 0], [], []>} : vector<16x8xf32>, vector<16x8xf32>, vector<16x16xf32> -> vector<16x16xf32>
    %cst_20 = arith.constant -1.000000e+30 : f32
    %64 = vector.broadcast %cst_20 : f32 to vector<16x16xf32>
    %65 = arith.select %43, %63, %64 : vector<16x16xi1>, vector<16x16xf32>
    %cst_21 = arith.constant dense<0xFF800000> : vector<16xf32>
    %66 = vector.multi_reduction <maximumf>, %65, %cst_21 [1] : vector<16x16xf32> to vector<16xf32>
    %67 = vector.shape_cast %66 : vector<16xf32> to vector<16x1xf32>
    %68 = vector.broadcast %67 : vector<16x1xf32> to vector<16x16xf32>
    %69 = arith.subf %65, %68 : vector<16x16xf32>
    %70 = math.exp %69 : vector<16x16xf32>
    %cst_22 = arith.constant dense<0.000000e+00> : vector<16xf32>
    %71 = vector.multi_reduction <add>, %70, %cst_22 [1] : vector<16x16xf32> to vector<16xf32>
    %72 = vector.shape_cast %71 : vector<16xf32> to vector<16x1xf32>
    %73 = tpu.reciprocal %72 {approx = true} : vector<16x1xf32> -> vector<16x1xf32>
    %74 = vector.broadcast %73 : vector<16x1xf32> to vector<16x16xf32>
    %75 = arith.mulf %70, %74 : vector<16x16xf32>
    %76 = vector.extract_strided_slice %8 {offsets = [0, 8], sizes = [16, 8], strides = [1, 1]} : vector<16x32xf32> to vector<16x8xf32>
    %cst_23 = arith.constant dense<0.000000e+00> : vector<16x8xf32>
    %77 = tpu.matmul %75, %76, %cst_23 {dimension_numbers = #tpu.dot_dimension_numbers<[1], [0], [0], [1], [0, 0, 1, 1], [], []>} : vector<16x16xf32>, vector<16x8xf32>, vector<16x8xf32> -> vector<16x8xf32>
    %78 = vector.extract_strided_slice %6 {offsets = [0, 16], sizes = [16, 8], strides = [1, 1]} : vector<16x32xf32> to vector<16x8xf32>
    %79 = vector.extract_strided_slice %7 {offsets = [0, 16], sizes = [16, 8], strides = [1, 1]} : vector<16x32xf32> to vector<16x8xf32>
    %cst_24 = arith.constant dense<0.000000e+00> : vector<16x16xf32>
    %80 = tpu.matmul %78, %79, %cst_24 {dimension_numbers = #tpu.dot_dimension_numbers<[1], [1], [0], [0], [0, 0, 1, 0], [], []>} : vector<16x8xf32>, vector<16x8xf32>, vector<16x16xf32> -> vector<16x16xf32>
    %cst_25 = arith.constant -1.000000e+30 : f32
    %81 = vector.broadcast %cst_25 : f32 to vector<16x16xf32>
    %82 = arith.select %43, %80, %81 : vector<16x16xi1>, vector<16x16xf32>
    %cst_26 = arith.constant dense<0xFF800000> : vector<16xf32>
    %83 = vector.multi_reduction <maximumf>, %82, %cst_26 [1] : vector<16x16xf32> to vector<16xf32>
    %84 = vector.shape_cast %83 : vector<16xf32> to vector<16x1xf32>
    %85 = vector.broadcast %84 : vector<16x1xf32> to vector<16x16xf32>
    %86 = arith.subf %82, %85 : vector<16x16xf32>
    %87 = math.exp %86 : vector<16x16xf32>
    %cst_27 = arith.constant dense<0.000000e+00> : vector<16xf32>
    %88 = vector.multi_reduction <add>, %87, %cst_27 [1] : vector<16x16xf32> to vector<16xf32>
    %89 = vector.shape_cast %88 : vector<16xf32> to vector<16x1xf32>
    %90 = tpu.reciprocal %89 {approx = true} : vector<16x1xf32> -> vector<16x1xf32>
    %91 = vector.broadcast %90 : vector<16x1xf32> to vector<16x16xf32>
    %92 = arith.mulf %87, %91 : vector<16x16xf32>
    %93 = vector.extract_strided_slice %8 {offsets = [0, 16], sizes = [16, 8], strides = [1, 1]} : vector<16x32xf32> to vector<16x8xf32>
    %cst_28 = arith.constant dense<0.000000e+00> : vector<16x8xf32>
    %94 = tpu.matmul %92, %93, %cst_28 {dimension_numbers = #tpu.dot_dimension_numbers<[1], [0], [0], [1], [0, 0, 1, 1], [], []>} : vector<16x16xf32>, vector<16x8xf32>, vector<16x8xf32> -> vector<16x8xf32>
    %95 = vector.extract_strided_slice %6 {offsets = [0, 24], sizes = [16, 8], strides = [1, 1]} : vector<16x32xf32> to vector<16x8xf32>
    %96 = vector.extract_strided_slice %7 {offsets = [0, 24], sizes = [16, 8], strides = [1, 1]} : vector<16x32xf32> to vector<16x8xf32>
    %cst_29 = arith.constant dense<0.000000e+00> : vector<16x16xf32>
    %97 = tpu.matmul %95, %96, %cst_29 {dimension_numbers = #tpu.dot_dimension_numbers<[1], [1], [0], [0], [0, 0, 1, 0], [], []>} : vector<16x8xf32>, vector<16x8xf32>, vector<16x16xf32> -> vector<16x16xf32>
    %cst_30 = arith.constant -1.000000e+30 : f32
    %98 = vector.broadcast %cst_30 : f32 to vector<16x16xf32>
    %99 = arith.select %43, %97, %98 : vector<16x16xi1>, vector<16x16xf32>
    %cst_31 = arith.constant dense<0xFF800000> : vector<16xf32>
    %100 = vector.multi_reduction <maximumf>, %99, %cst_31 [1] : vector<16x16xf32> to vector<16xf32>
    %101 = vector.shape_cast %100 : vector<16xf32> to vector<16x1xf32>
    %102 = vector.broadcast %101 : vector<16x1xf32> to vector<16x16xf32>
    %103 = arith.subf %99, %102 : vector<16x16xf32>
    %104 = math.exp %103 : vector<16x16xf32>
    %cst_32 = arith.constant dense<0.000000e+00> : vector<16xf32>
    %105 = vector.multi_reduction <add>, %104, %cst_32 [1] : vector<16x16xf32> to vector<16xf32>
    %106 = vector.shape_cast %105 : vector<16xf32> to vector<16x1xf32>
    %107 = tpu.reciprocal %106 {approx = true} : vector<16x1xf32> -> vector<16x1xf32>
    %108 = vector.broadcast %107 : vector<16x1xf32> to vector<16x16xf32>
    %109 = arith.mulf %104, %108 : vector<16x16xf32>
    %110 = vector.extract_strided_slice %8 {offsets = [0, 24], sizes = [16, 8], strides = [1, 1]} : vector<16x32xf32> to vector<16x8xf32>
    %cst_33 = arith.constant dense<0.000000e+00> : vector<16x8xf32>
    %111 = tpu.matmul %109, %110, %cst_33 {dimension_numbers = #tpu.dot_dimension_numbers<[1], [0], [0], [1], [0, 0, 1, 1], [], []>} : vector<16x16xf32>, vector<16x8xf32>, vector<16x8xf32> -> vector<16x8xf32>
    %112 = tpu.concatenate %60, %77, %94, %111 in 1 : vector<16x8xf32>, vector<16x8xf32>, vector<16x8xf32>, vector<16x8xf32> -> vector<16x32xf32>
    %c0_34 = arith.constant 0 : index
    %c96 = arith.constant 96 : index
    %113 = vector.load %arg1[%c0_34, %c96] : memref<128x128xf32, #tpu.memory_space<vmem>>, vector<32x32xf32>
    %cst_35 = arith.constant dense<0.000000e+00> : vector<16x32xf32>
    %114 = tpu.matmul %112, %113, %cst_35 {dimension_numbers = #tpu.dot_dimension_numbers<[1], [0], [0], [1], [0, 0, 1, 1], [], []>} : vector<16x32xf32>, vector<32x32xf32>, vector<16x32xf32> -> vector<16x32xf32>
    %c0_36 = arith.constant 0 : index
    %c96_37 = arith.constant 96 : index
    %115 = vector.load %arg2[%c0_36, %c96_37] : memref<2x128xf32, #tpu.memory_space<vmem>>, vector<1x32xf32>
    %116 = vector.broadcast %115 : vector<1x32xf32> to vector<16x32xf32>
    %117 = arith.addf %114, %116 : vector<16x32xf32>
    %c32 = arith.constant 32 : index
    %c0_38 = arith.constant 0 : index
    %118 = vector.load %arg1[%c32, %c0_38] : memref<128x128xf32, #tpu.memory_space<vmem>>, vector<32x64xf32>
    %cst_39 = arith.constant dense<0.000000e+00> : vector<16x64xf32>
    %119 = tpu.matmul %117, %118, %cst_39 {dimension_numbers = #tpu.dot_dimension_numbers<[1], [0], [0], [1], [0, 0, 1, 1], [], []>} : vector<16x32xf32>, vector<32x64xf32>, vector<16x64xf32> -> vector<16x64xf32>
    %c1 = arith.constant 1 : index
    %c0_40 = arith.constant 0 : index
    %120 = vector.load %arg2[%c1, %c0_40] : memref<2x128xf32, #tpu.memory_space<vmem>>, vector<1x64xf32>
    %121 = vector.broadcast %120 : vector<1x64xf32> to vector<16x64xf32>
    %122 = arith.addf %119, %121 : vector<16x64xf32>
    %cst_41 = arith.constant 0.000000e+00 : f32
    %123 = vector.broadcast %cst_41 : f32 to vector<16x64xf32>
    %124 = arith.maximumf %122, %123 : vector<16x64xf32>
    %c64 = arith.constant 64 : index
    %c0_42 = arith.constant 0 : index
    %125 = vector.load %arg1[%c64, %c0_42] : memref<128x128xf32, #tpu.memory_space<vmem>>, vector<64x32xf32>
    %cst_43 = arith.constant dense<0.000000e+00> : vector<16x32xf32>
    %126 = tpu.matmul %124, %125, %cst_43 {dimension_numbers = #tpu.dot_dimension_numbers<[1], [0], [0], [1], [0, 0, 1, 1], [], []>} : vector<16x64xf32>, vector<64x32xf32>, vector<16x32xf32> -> vector<16x32xf32>
    %c1_44 = arith.constant 1 : index
    %c64_45 = arith.constant 64 : index
    %127 = vector.load %arg2[%c1_44, %c64_45] : memref<2x128xf32, #tpu.memory_space<vmem>>, vector<1x32xf32>
    %128 = vector.broadcast %127 : vector<1x32xf32> to vector<16x32xf32>
    %129 = arith.addf %126, %128 : vector<16x32xf32>
    %c0_46 = arith.constant 0 : index
    %c0_47 = arith.constant 0 : index
    %130 = vector.load %arg3[%c0_46, %c0_47] : memref<16x32xf32, #tpu.memory_space<vmem>>, vector<16x32xf32>
    tpu.vector_store %arg3[%c0_46, %c0_47], %129 {strides = array<i32>} : memref<16x32xf32, #tpu.memory_space<vmem>>, vector<16x32xf32>,
    return
  }
}

</mosaic_0001>

<bundles_post_ra>
// kernel: tpu_custom_call.1
= control target key start
LH: loop header
LB: loop body
LE: loop exit
PB: predicated region body
PF: predicated region fallthrough
CT: control target
= control target key end

     0   :  { %8 = vsyncpa [#allocation3], 0  ;;  %s2027_s0 = inlined_call_operand.hbm [shape: f32[16,32], index: 0, kind: input, shape index: {}]   ;;  %s2028_s1 = inlined_call_operand.hbm [shape: f32[128,128], index: 1, kind: input, shape index: {}]   ;;  %s2029_s2 = inlined_call_operand.vmem [shape: f32[2,128], index: 2, kind: input, shape index: {}]   ;;  %s2030_s3 = inlined_call_operand.hbm [shape: f32[16,32], index: 3, kind: output, shape index: {}]  }
   0x1   :  { %9 = vsyncpa [#allocation6], 0 }
   0x2   :  { %10 = vsyncpa [#allocation4], 0  ;;  %s1780_s12 = smov [#allocation2]   ;;  %s1708_s16 = scalar_lea.hbm %s2027_s0, 256 }
   0x3   :  { %s16_s13 = sshll.u32 %s1780_s12, 4  ;;  %p1709_p0 = scmp.ne.s32.totalorder %s2027_s0, %s1708_s16  ;;  %s17_s13 = int_to_ptr.vmem [resolvable:$true] %s16_s13 }
   0x4   :  { %p1712_p1 = scmp.lt.u32.totalorder %s1708_s16, %s2027_s0 }
   0x6   :  { %p1714_p2 = pnand %p1712_p1, %p1709_p0 }
   0x8   :  { %1717 = shalt.err (!%p1714_p2)
}
   0x9   :  { %s1718_s21 = scalar_lea.vmem %s17_s13, 256  ;;  %p1723_p4 = scmp.lt.s32.totalorder %s17_s13, %s17_s13 }
   0xa   :  { %p1719_p3 = scmp.ne.s32.totalorder %s17_s13, %s1718_s21  ;;  %p1724_p5 = scmp.lt.s32.totalorder %s1718_s21, %s1718_s21 }
   0xc   :  { %p1725_p6 = por %p1724_p5, %p1723_p4 }
   0xe   :  { %p1726_p7 = pnand %p1725_p6, %p1719_p3 }
  0x10   :  { %1729 = shalt.err (!%p1726_p7)
}
  0x11   :  { %s1781_s22 = smov 128   ;;  %s1782_s23 = smov 8  }
  0x12   :  { %22 = dma.hbm_to_vmem [thread:$0]  %s2027_s0, 256, %s17_s13, [#allocation3], %s1781_s22, %s1781_s22, %s1782_s23  }
  0x13   :  { %s1783_s26 = smov [#allocation5]   ;;  %s1730_s30 = scalar_lea.hbm %s2028_s1, 2048 }
  0x14   :  { %s28_s27 = sshll.u32 %s1783_s26, 4  ;;  %p1731_p8 = scmp.ne.s32.totalorder %s2028_s1, %s1730_s30  ;;  %s29_s27 = int_to_ptr.vmem [resolvable:$true] %s28_s27 }
  0x15   :  { %p1734_p9 = scmp.lt.u32.totalorder %s1730_s30, %s2028_s1 }
  0x17   :  { %p1736_p10 = pnand %p1734_p9, %p1731_p8 }
  0x19   :  { %1739 = shalt.err (!%p1736_p10)
}
  0x1a   :  { %s1740_s8 = scalar_lea.vmem %s29_s27, 2048  ;;  %p1745_p12 = scmp.lt.s32.totalorder %s29_s27, %s29_s27 }
  0x1b   :  { %p1741_p11 = scmp.ne.s32.totalorder %s29_s27, %s1740_s8  ;;  %p1746_p13 = scmp.lt.s32.totalorder %s1740_s8, %s1740_s8 }
  0x1d   :  { %p1747_p0 = por %p1746_p13, %p1745_p12 }
  0x1f   :  { %p1748_p1 = pnand %p1747_p0, %p1741_p11 }
  0x21   :  { %1751 = shalt.err (!%p1748_p1)
}
  0x22   :  { %34 = dma.hbm_to_vmem [thread:$0]  %s2028_s1, 2048, %s29_s27, [#allocation6], %s1781_s22, %s1781_s22, %s1782_s23  }
  0x23   :  { %1774 = dma.done.wait [#allocation3], 256  }
  0x24   :  { %1775 = vsyncadd [#allocation3], 4294967040 }
  0x25   :  { %1776 = dma.done.wait [#allocation6], 2048  }
  0x26   :  { %1777 = vsyncadd [#allocation6], 4294965248  ;;  %vm54_vm0 = vcmask 261120   ;;  %v1849_v0 = vld [vmem:[#allocation5] sm:$0xff]  ;;  %v1851_v1 = vld [vmem:[#allocation5 + $0x8] sm:$0xff]  ;;  %vm185_vm1 = vcmask 64512   ;;  %v136_v26 = vlaneseq }
  0x27   :  { %v1853_v2 = vld [vmem:[#allocation5 + $0x10] sm:$0xff]  ;;  %v1666_v3 = vpack.i.bf16 %v1851_v1, %v1849_v0  ;;  %v1527_v4 = vpack.c.bf16 %v1851_v1, %v1849_v0  ;;  %v1859_v5 = vld [vmem:[#allocation5 + $0x18] sm:$0xff]  ;;  %s1784_s11 = smov 120   ;;  %s1785_s12 = smov 96   ;;  %vm1888_vm2 = vmpackc.low %vm185_vm1, %vm185_vm1  ;;  %vm271_vm5 = vcmask 130048   ;;  %vm1015_vm6 = vcmask 195584  }
  0x28   :  { %v43_v6 = vld [vmem:[#allocation2] sm:$0xff]  ;;  %v1531_v7 = vpack.c.bf16 %v1859_v5, %v1853_v2  ;;  %v44_v8 = vld [vmem:[#allocation2 + $0x8] sm:$0xff]  ;;  %s1786_s13 = smov 88   ;;  %v137_v27 = vshrl.u32 %v136_v26, 7  ;;  %v140_v29 = vand.u32 127, %v136_v26  ;;  %s1787_s14 = smov 64  }
  0x29   :  { %1427 = vmatprep.mubr.msk.f32.mxu1 %vm54_vm0, %v43_v6  ;;  %1528 = vmatprep.subr.bf16.mxu1 %v1527_v4  ;;  %v1868_v9 = vld [vmem:[%s2029_s2] ss:$0 sm:$0xff]  ;;  %s1788_s15 = smov 80   ;;  %s1789_s16 = smov 56   ;;  %vm1223_vm7 = vcmask 523264  }
  0x2a   :  { %1530 = vmatpush3.bf16.msra.mxu1 %v1527_v4  ;;  %v138_v28 = vadd.s32 8, %v137_v27  ;;  %v169_v31 = vand.u32 1, %v140_v29  ;;  %v145_v32 = vand.u32 1, %v137_v27  ;;  %s1790_s17 = smov 112   ;;  %s1791_s18 = smov 72  }
  0x2b   :  { %1532 = vmatprep.subr.bf16.mxu1 %v1531_v7  ;;  %s1792_s19 = smov 104   ;;  %s1793_s20 = smov 48  }
  0x2c   :  { %v152_v30 = vand.u32 1, %v138_v28  ;;  %vm1908_vm4 = vcmp.eq.s32.totalorder %v145_v32, %v169_v31  ;;  %s1794_s21 = smov 32   ;;  %s1795_s24 = smov 40  }
  0x2d   :  { %s1796_s25 = smov 16   ;;  %s1797_s26 = smov 24  }
  0x2e   :  { %1534 = vmatpush3.bf16.msra.mxu1 %v1531_v7  ;;  %vm1904_vm3 = vcmp.eq.s32.totalorder %v152_v30, %v169_v31  ;;  %s1798_s29 = smov [#allocation7]  }
  0x2f   :  { %s1312_s30 = sshll.u32 %s1798_s29, 4  ;;  %s1313_s30 = int_to_ptr.vmem [resolvable:$true] %s1312_s30 }
  0x30   :  { %p1757_p3 = scmp.lt.s32.totalorder %s1313_s30, %s1313_s30 }
  0x31   :  { %1428 = vmatmul.mubr.msk.f32.vlgmr.msra.gmra.mrb[0].mxu1 %vm54_vm0, %v44_v8 }
 0x104   :  { %v1429_v10 = vpop.f32.mrb[0].mxu1 }
 0x105   :  { %v1871_v11 = vadd.f32 %v1429_v10, %v1868_v9  ;;  %v127_v12 = vpop.f32.mrb[1].mxu1 }
 0x106   :  { %v1874_v13 = vadd.f32 %v1868_v9, %v127_v12 }
 0x108   :  { %381 = vrot.lane.b32.xlu1 %v1874_v13, %s1784_s11  ;;  %1434 = vmatprep.mubr.msk.f32.mxu1 %vm185_vm1, %v1874_v13  ;;  %v1881_v14 = vpack.i.bf16 %v1871_v11, %v1874_v13 }
 0x10a   :  { %1627 = vrot.lane.b32.xlu0 %v1881_v14, %s1785_s12 }
 0x10c   :  { %383 = vrot.lane.b32.xlu1 %v1871_v11, %s1784_s11 }
 0x10e   :  { %1632 = vrot.lane.b32.xlu0 %v1881_v14, %s1786_s13 }
 0x17a   :  { %v382_v24 = vpop.permute.xlu1 %381 }
 0x17c   :  { %v1628_v15 = vpop.permute.xlu0 %1627 }
 0x17d   :  { %v1630_v16 = vunpack.i.h.bf16 %v1628_v15  ;;  %v1629_v17 = vunpack.i.l.bf16 %v1628_v15 }
 0x17e   :  { %v384_v25 = vpop.permute.xlu1 %383 }
 0x17f   :  { %v1535_v19 = vpack.c.bf16 %v1630_v16, %v1629_v17 }
 0x180   :  { %v1633_v20 = vpop.permute.xlu0 %1632 }
 0x181   :  { %v1635_v21 = vunpack.i.h.bf16 %v1633_v20  ;;  %v1634_v22 = vunpack.i.l.bf16 %v1633_v20  ;;  %1537 = vmatprep.subr.msk.bf16.mxu1 %vm1888_vm2, %v1535_v19 }
 0x182   :  { %1540 = vmatpush3.bf16.xpose.msk.msra.mxu1 %vm1888_vm2, %v1535_v19 }
 0x183   :  { %v1545_v23 = vpack.c.bf16 %v1635_v21, %v1634_v22 }
 0x185   :  { %1547 = vmatprep.subr.msk.bf16.mxu1 %vm1888_vm2, %v1545_v23 }
 0x189   :  { %1435 = vmatmul.mubr.msk.f32.vlgmr.msra.gmra.mrb[2].mxu1 %vm185_vm1, %v1871_v11 }
 0x18a   :  { %1550 = vmatpush3.bf16.xpose.msk.msra.mxu1 %vm1888_vm2, %v1545_v23  ;;  %1448 = vmatprep.mubr.msk.f32.mxu1 %vm185_vm1, %v382_v24 }
 0x191   :  { %1449 = vmatmul.mubr.msk.f32.vlgmr.msra.gmra.mrb[4].mxu1 %vm185_vm1, %v384_v25 }
 0x25c   :  { %v1436_v35 = vpop.f32.mrb[2].mxu1 }
 0x25d   :  { %v270_v36 = vsel %vm1904_vm3, %v1436_v35, -1e+30  ;;  %v260_v37 = vpop.f32.mrb[3].mxu1 }
 0x25e   :  { %v269_v38 = vsel %vm1908_vm4, %v260_v37, -1e+30  ;;  %v275_v39 = vsel %vm271_vm5, %v270_v36, -inf }
 0x25f   :  { %276 = vmax.xlane.f32.xlu1 %v275_v39  ;;  %v272_v40 = vsel %vm271_vm5, %v269_v38, -inf }
 0x260   :  { %273 = vmax.xlane.f32.xlu0 %v272_v40 }
 0x264   :  { %v1450_v41 = vpop.f32.mrb[4].mxu1 }
 0x265   :  { %v463_v42 = vpop.f32.mrb[5].mxu1  ;;  %v473_v45 = vsel %vm1904_vm3, %v1450_v41, -1e+30 }
 0x266   :  { %v472_v43 = vsel %vm1908_vm4, %v463_v42, -1e+30  ;;  %v477_v46 = vsel %vm271_vm5, %v473_v45, -inf }
 0x267   :  { %v474_v44 = vsel %vm271_vm5, %v472_v43, -inf }
 0x268   :  { %475 = vmax.xlane.f32.xlu0 %v474_v44 }
 0x26c   :  { %478 = vmax.xlane.f32.xlu0 %v477_v46 }
 0x270   :  { %1637 = vrot.lane.b32.xlu1 %v1881_v14, %s1787_s14 }
 0x2ec   :  { %v277_v47 = vpop.xlane.xlu1 %276 }
 0x2ed   :  { %v279_v48 = vsub.f32 %v270_v36, %v277_v47  ;;  %v274_v49 = vpop.xlane.xlu0 %273 }
 0x2ee   :  { %v278_v50 = vsub.f32 %v269_v38, %v274_v49 }
 0x2ef   :  { %v282_v51 = vmul.f32 1.442695, %v279_v48 }
 0x2f0   :  { %v280_v52 = vmul.f32 1.442695, %v278_v50  ;;  %v1638_v53 = vpop.permute.xlu1 %1637 }
 0x2f1   :  { %1676 = vpow2.f32 %v282_v51  ;;  %v1640_v54 = vunpack.i.h.bf16 %v1638_v53  ;;  %v1639_v55 = vunpack.i.l.bf16 %v1638_v53 }
 0x2f2   :  { %1678 = vpow2.f32 %v280_v52 }
 0x2f3   :  { %v1541_v56 = vpack.c.bf16 %v1640_v54, %v1639_v55 }
 0x2f5   :  { %1542 = vmatprep.subr.bf16.mxu0 %v1541_v56  ;;  %v476_v57 = vpop.xlane.xlu0 %475 }
 0x2f6   :  { %1544 = vmatpush3.bf16.msra.mxu0 %v1541_v56  ;;  %v480_v8 = vsub.f32 %v472_v43, %v476_v57 }
 0x2f8   :  { %v482_v10 = vmul.f32 1.442695, %v480_v8 }
 0x2f9   :  { %v479_v58 = vpop.xlane.xlu0 %478 }
 0x2fa   :  { %v481_v59 = vsub.f32 %v473_v45, %v479_v58 }
 0x2fb   :  { %v1677_v60 = vpop.eup %1676 }
 0x2fc   :  { %v1679_v61 = vpop.eup %1678  ;;  %v484_v62 = vmul.f32 1.442695, %v481_v59  ;;  %v287_v63 = vsel %vm271_vm5, %v1677_v60, 0.0 }
 0x2fd   :  { %288 = vadd.xlane.f32.xlu0 %v287_v63  ;;  %v284_v4 = vsel %vm271_vm5, %v1679_v61, 0.0 }
 0x2fe   :  { %1680 = vpow2.f32 %v484_v62  ;;  %285 = vadd.xlane.f32.xlu1 %v284_v4 }
 0x2ff   :  { %1682 = vpow2.f32 %v482_v10 }
 0x308   :  { %v1681_v6 = vpop.eup %1680 }
 0x309   :  { %v489_v7 = vsel %vm271_vm5, %v1681_v6, 0.0  ;;  %v1683_v12 = vpop.eup %1682 }
 0x30a   :  { %490 = vadd.xlane.f32.xlu0 %v489_v7  ;;  %v486_v15 = vsel %vm271_vm5, %v1683_v12, 0.0 }
 0x30f   :  { %1647 = vrot.lane.b32.xlu1 %v1881_v14, %s1788_s15 }
 0x320   :  { %1642 = vrot.lane.b32.xlu0 %v1881_v14, %s1789_s16 }
 0x324   :  { %585 = vrot.lane.b32.xlu0 %v1871_v11, %s1790_s17 }
 0x333   :  { %487 = vadd.xlane.f32.xlu1 %v486_v15 }
 0x344   :  { %583 = vrot.lane.b32.xlu1 %v1874_v13, %s1790_s17 }
 0x38a   :  { %v289_v16 = vpop.xlane.xlu0 %288 }
 0x38b   :  { %1684 = vrcp.f32 %v289_v16  ;;  %v286_v17 = vpop.xlane.xlu1 %285 }
 0x38c   :  { %1686 = vrcp.f32 %v286_v17 }
 0x38f   :  { %v1648_v24 = vpop.permute.xlu1 %1647 }
 0x390   :  { %v1650_v26 = vunpack.i.h.bf16 %v1648_v24  ;;  %v1649_v27 = vunpack.i.l.bf16 %v1648_v24 }
 0x392   :  { %v1555_v31 = vpack.c.bf16 %v1650_v26, %v1649_v27 }
 0x395   :  { %v1685_v19 = vpop.eup %1684 }
 0x396   :  { %v1687_v20 = vpop.eup %1686  ;;  %v293_v23 = vmul.f32 %v1685_v19, %v1677_v60 }
 0x397   :  { %v491_v21 = vpop.xlane.xlu0 %490  ;;  %v292_v22 = vmul.f32 %v1687_v20, %v1679_v61 }
 0x398   :  { %1688 = vrcp.f32 %v491_v21 }
 0x399   :  { %1441 = vmatprep.mubr.msk.f32.mxu0 %vm271_vm5, %v292_v22 }
 0x39a   :  { %1442 = vmatmul.mubr.msk.f32.vlgmr.msra.gmra.mrb[0].mxu0 %vm271_vm5, %v293_v23 }
 0x39b   :  { %v1643_v25 = vpop.permute.xlu0 %1642 }
 0x39c   :  { %v1645_v28 = vunpack.i.h.bf16 %v1643_v25  ;;  %v1644_v29 = vunpack.i.l.bf16 %v1643_v25 }
 0x39e   :  { %v1551_v30 = vpack.c.bf16 %v1645_v28, %v1644_v29 }
 0x39f   :  { %v586_v40 = vpop.permute.xlu0 %585 }
 0x3a0   :  { %1552 = vmatprep.subr.bf16.mxu0 %v1551_v30 }
 0x3a1   :  { %1554 = vmatpush3.bf16.msra.mxu0 %v1551_v30 }
 0x3a2   :  { %1557 = vmatprep.subr.msk.bf16.mxu0 %vm1888_vm2, %v1555_v31  ;;  %v1689_v35 = vpop.eup %1688 }
 0x3a3   :  { %v495_v38 = vmul.f32 %v1689_v35, %v1681_v6 }
 0x3c0   :  { %v488_v32 = vpop.xlane.xlu1 %487 }
 0x3c1   :  { %1690 = vrcp.f32 %v488_v32 }
 0x3c4   :  { %v584_v39 = vpop.permute.xlu1 %583 }
 0x3cb   :  { %v1691_v36 = vpop.eup %1690 }
 0x3cc   :  { %v494_v37 = vmul.f32 %v1691_v36, %v1683_v12 }
 0x3ce   :  { %1455 = vmatprep.mubr.msk.f32.mxu0 %vm271_vm5, %v494_v37 }
 0x3cf   :  { %1456 = vmatmul.mubr.msk.f32.vlgmr.msra.gmra.mrb[2].mxu0 %vm271_vm5, %v495_v38  ;;  %v1671_v38 = vpack.i.bf16 %v1859_v5, %v1853_v2 }
 0x3d0   :  { %1560 = vmatpush3.bf16.xpose.msk.msra.mxu0 %vm1888_vm2, %v1555_v31  ;;  %1462 = vmatprep.mubr.msk.f32.mxu0 %vm185_vm1, %v584_v39 }
 0x3d7   :  { %1463 = vmatmul.mubr.msk.f32.vlgmr.msra.gmra.mrb[4].mxu0 %vm185_vm1, %v586_v40 }
 0x46d   :  { %v1944_v41 = vpop.f32.mrb[0].mxu0 }
 0x46e   :  { %v1946_v42 = vpop.f32.mrb[1].mxu0 }
 0x4a2   :  { %v1948_v43 = vpop.f32.mrb[2].mxu0 }
 0x4a3   :  { %v1950_v44 = vpop.f32.mrb[3].mxu0 }
 0x4aa   :  { %v1464_v45 = vpop.f32.mrb[4].mxu0 }
 0x4ab   :  { %v675_v46 = vsel %vm1904_vm3, %v1464_v45, -1e+30  ;;  %v665_v47 = vpop.f32.mrb[5].mxu0 }
 0x4ac   :  { %v674_v48 = vsel %vm1908_vm4, %v665_v47, -1e+30  ;;  %v679_v49 = vsel %vm271_vm5, %v675_v46, -inf }
 0x4ad   :  { %680 = vmax.xlane.f32.xlu0 %v679_v49  ;;  %v676_v50 = vsel %vm271_vm5, %v674_v48, -inf }
 0x4ae   :  { %677 = vmax.xlane.f32.xlu1 %v676_v50 }
 0x53a   :  { %v681_v51 = vpop.xlane.xlu0 %680 }
 0x53b   :  { %v683_v52 = vsub.f32 %v675_v46, %v681_v51  ;;  %v678_v53 = vpop.xlane.xlu1 %677 }
 0x53c   :  { %v682_v54 = vsub.f32 %v674_v48, %v678_v53  ;;  %v1119_v53 = vld [vmem:[#allocation5 + $0x20] sm:$0xff] }
 0x53d   :  { %v686_v55 = vmul.f32 1.442695, %v683_v52 }
 0x53e   :  { %v684_v56 = vmul.f32 1.442695, %v682_v54  ;;  %v1120_v54 = vld [vmem:[#allocation5 + $0x28] sm:$0xff] }
 0x53f   :  { %1692 = vpow2.f32 %v686_v55  ;;  %v1583_v55 = vpack.c.bf16 %v1120_v54, %v1119_v53 }
 0x540   :  { %1694 = vpow2.f32 %v684_v56 }
 0x549   :  { %v1693_v57 = vpop.eup %1692 }
 0x54a   :  { %v1695_v58 = vpop.eup %1694  ;;  %v691_v59 = vsel %vm271_vm5, %v1693_v57, 0.0 }
 0x54b   :  { %692 = vadd.xlane.f32.xlu1 %v691_v59  ;;  %v688_v60 = vsel %vm271_vm5, %v1695_v58, 0.0 }
 0x54c   :  { %689 = vadd.xlane.f32.xlu0 %v688_v60 }
 0x55c   :  { %1657 = vrot.lane.b32.xlu1 %v1881_v14, %s1791_s18 }
 0x560   :  { %785 = vrot.lane.b32.xlu1 %v1874_v13, %s1792_s19 }
 0x562   :  { %1652 = vrot.lane.b32.xlu0 %v1881_v14, %s1793_s20 }
 0x566   :  { %787 = vrot.lane.b32.xlu0 %v1871_v11, %s1792_s19 }
 0x5d8   :  { %v693_v61 = vpop.xlane.xlu1 %692 }
 0x5d9   :  { %1696 = vrcp.f32 %v693_v61  ;;  %v690_v62 = vpop.xlane.xlu0 %689 }
 0x5da   :  { %1698 = vrcp.f32 %v690_v62 }
 0x5dc   :  { %v1658_v63 = vpop.permute.xlu1 %1657 }
 0x5dd   :  { %v1653_v4 = vpop.permute.xlu0 %1652  ;;  %v1660_v6 = vunpack.i.h.bf16 %v1658_v63  ;;  %v1659_v7 = vunpack.i.l.bf16 %v1658_v63 }
 0x5de   :  { %v1655_v8 = vunpack.i.h.bf16 %v1653_v4  ;;  %v1654_v10 = vunpack.i.l.bf16 %v1653_v4 }
 0x5df   :  { %v1565_v15 = vpack.c.bf16 %v1660_v6, %v1659_v7 }
 0x5e0   :  { %v1561_v12 = vpack.c.bf16 %v1655_v8, %v1654_v10  ;;  %v786_v19 = vpop.permute.xlu1 %785 }
 0x5e1   :  { %v788_v20 = vpop.permute.xlu0 %787 }
 0x5e2   :  { %1562 = vmatprep.subr.bf16.mxu1 %v1561_v12 }
 0x5e3   :  { %v1697_v16 = vpop.eup %1696  ;;  %1564 = vmatpush3.bf16.msra.mxu1 %v1561_v12 }
 0x5e4   :  { %v1699_v13 = vpop.eup %1698  ;;  %1567 = vmatprep.subr.msk.bf16.mxu1 %vm1888_vm2, %v1565_v15  ;;  %v697_v17 = vmul.f32 %v1697_v16, %v1693_v57 }
 0x5e5   :  { %v696_v11 = vmul.f32 %v1699_v13, %v1695_v58  ;;  %v1212_v13 = vld [vmem:[#allocation5 + $0x48] sm:$0xff] }
 0x5e7   :  { %1469 = vmatprep.mubr.msk.f32.mxu1 %vm271_vm5, %v696_v11  ;;  %v1213_v11 = vld [vmem:[#allocation5 + $0x50] sm:$0xff] }
 0x5e8   :  { %1470 = vmatmul.mubr.msk.f32.vlgmr.msra.gmra.mrb[6].mxu1 %vm271_vm5, %v697_v17  ;;  %v1214_v17 = vld [vmem:[#allocation5 + $0x58] sm:$0xff] }
 0x5e9   :  { %1476 = vmatprep.mubr.msk.f32.mxu1 %vm185_vm1, %v786_v19  ;;  %v1595_v19 = vpack.c.bf16 %v1214_v17, %v1213_v11 }
 0x5ec   :  { %1570 = vmatpush3.bf16.xpose.msk.msra.mxu1 %vm1888_vm2, %v1565_v15  ;;  %v1122_v15 = vld [vmem:[#allocation5 + $0x38] sm:$0xff] }
 0x5ed   :  { %1584 = vmatprep.subr.bf16.mxu1 %v1583_v55 }
 0x5f3   :  { %1477 = vmatmul.mubr.msk.f32.vlgmr.msra.gmra.mrb[8].mxu1 %vm185_vm1, %v788_v20  ;;  %v1215_v20 = vld [vmem:[#allocation5 + $0x60] sm:$0xff] }
 0x5f4   :  { %1586 = vmatpush3.bf16.msra.mxu1 %v1583_v55 }
 0x6bb   :  { %v1471_v21 = vpop.f32.mrb[6].mxu1 }
 0x6bc   :  { %v776_v22 = vpop.f32.mrb[7].mxu1 }
 0x6c6   :  { %v1478_v23 = vpop.f32.mrb[8].mxu1 }
 0x6c7   :  { %v877_v24 = vsel %vm1904_vm3, %v1478_v23, -1e+30  ;;  %v867_v25 = vpop.f32.mrb[9].mxu1 }
 0x6c8   :  { %v876_v26 = vsel %vm1908_vm4, %v867_v25, -1e+30  ;;  %v881_v27 = vsel %vm271_vm5, %v877_v24, -inf }
 0x6c9   :  { %882 = vmax.xlane.f32.xlu0 %v881_v27  ;;  %v878_v28 = vsel %vm271_vm5, %v876_v26, -inf }
 0x6ca   :  { %879 = vmax.xlane.f32.xlu1 %v878_v28  ;;  %v1354_v28 = vld [vmem:[%s2029_s2 + $0x1] ss:$0 sm:$0xff]  ;;  %s1752_s2 = scalar_lea.vmem %s1313_s30, 256 }
 0x6cb   :  { %p1753_p2 = scmp.ne.s32.totalorder %s1313_s30, %s1752_s2  ;;  %p1758_p4 = scmp.lt.s32.totalorder %s1752_s2, %s1752_s2 }
 0x6cd   :  { %p1759_p5 = por %p1758_p4, %p1757_p3 }
 0x6cf   :  { %p1760_p6 = pnand %p1759_p5, %p1753_p2 }
 0x756   :  { %v883_v18 = vpop.xlane.xlu0 %882 }
 0x757   :  { %v885_v29 = vsub.f32 %v877_v24, %v883_v18  ;;  %v880_v30 = vpop.xlane.xlu1 %879  ;;  %v1217_v18 = vld [vmem:[#allocation5 + $0x70] sm:$0xff] }
 0x758   :  { %v884_v31 = vsub.f32 %v876_v26, %v880_v30 }
 0x759   :  { %v888_v32 = vmul.f32 1.442695, %v885_v29  ;;  %v1218_v29 = vld [vmem:[#allocation5 + $0x78] sm:$0xff] }
 0x75a   :  { %v886_v35 = vmul.f32 1.442695, %v884_v31  ;;  %v1603_v30 = vpack.c.bf16 %v1218_v29, %v1217_v18 }
 0x75b   :  { %1700 = vpow2.f32 %v888_v32 }
 0x75c   :  { %1702 = vpow2.f32 %v886_v35 }
 0x765   :  { %v1701_v33 = vpop.eup %1700 }
 0x766   :  { %v1703_v36 = vpop.eup %1702  ;;  %v893_v37 = vsel %vm271_vm5, %v1701_v33, 0.0 }
 0x767   :  { %894 = vadd.xlane.f32.xlu1 %v893_v37  ;;  %v890_v34 = vsel %vm271_vm5, %v1703_v36, 0.0 }
 0x768   :  { %891 = vadd.xlane.f32.xlu0 %v890_v34 }
 0x778   :  { %1667 = vrot.lane.b32.xlu1 %v1666_v3, %s1794_s21 }
 0x77c   :  { %1672 = vrot.lane.b32.xlu1 %v1671_v38, %s1794_s21 }
 0x77e   :  { %1662 = vrot.lane.b32.xlu0 %v1881_v14, %s1795_s24 }
 0x780   :  { %991 = vrot.lane.b32.xlu1 %v1948_v43, %s1782_s23 }
 0x782   :  { %989 = vrot.lane.b32.xlu0 %v1950_v44, %s1782_s23 }
 0x784   :  { %999 = vrot.lane.b32.xlu1 %v1471_v21, %s1796_s25  ;;  %v1216_v21 = vld [vmem:[#allocation5 + $0x68] sm:$0xff] }
 0x786   :  { %997 = vrot.lane.b32.xlu0 %v776_v22, %s1796_s25  ;;  %v1599_v22 = vpack.c.bf16 %v1216_v21, %v1215_v20 }
 0x7f4   :  { %v895_v39 = vpop.xlane.xlu1 %894 }
 0x7f5   :  { %1704 = vrcp.f32 %v895_v39  ;;  %v892_v0 = vpop.xlane.xlu0 %891 }
 0x7f6   :  { %1706 = vrcp.f32 %v892_v0 }
 0x7f8   :  { %v1668_v1 = vpop.permute.xlu1 %1667 }
 0x7f9   :  { %v1670_v2 = vunpack.i.h.bf16 %v1668_v1  ;;  %v1669_v3 = vunpack.i.l.bf16 %v1668_v1  ;;  %v1663_v5 = vpop.permute.xlu0 %1662 }
 0x7fa   :  { %v1665_v40 = vunpack.i.h.bf16 %v1663_v5  ;;  %v1664_v45 = vunpack.i.l.bf16 %v1663_v5 }
 0x7fb   :  { %v1575_v14 = vpack.c.bf16 %v1670_v2, %v1669_v3 }
 0x7fc   :  { %v1571_v46 = vpack.c.bf16 %v1665_v40, %v1664_v45  ;;  %v1673_v47 = vpop.permute.xlu1 %1672 }
 0x7fd   :  { %v1675_v43 = vunpack.i.h.bf16 %v1673_v47  ;;  %v1674_v48 = vunpack.i.l.bf16 %v1673_v47  ;;  %v990_v59 = vpop.permute.xlu0 %989 }
 0x7fe   :  { %1572 = vmatprep.subr.bf16.mxu0 %v1571_v46  ;;  %v1011_v62 = vsel %vm185_vm1, %v1946_v42, %v990_v59  ;;  %v1211_v42 = vld [vmem:[#allocation5 + $0x40] sm:$0xff] }
 0x7ff   :  { %v1705_v44 = vpop.eup %1704  ;;  %1574 = vmatpush3.bf16.msra.mxu0 %v1571_v46  ;;  %v1579_v52 = vpack.c.bf16 %v1675_v43, %v1674_v48 }
 0x800   :  { %v1707_v49 = vpop.eup %1706  ;;  %1576 = vmatprep.subr.bf16.mxu0 %v1575_v14  ;;  %v899_v51 = vmul.f32 %v1705_v44, %v1701_v33  ;;  %v992_v58 = vpop.permute.xlu1 %991 }
 0x801   :  { %v898_v50 = vmul.f32 %v1707_v49, %v1703_v36  ;;  %v998_v61 = vpop.permute.xlu0 %997  ;;  %v1012_v4 = vsel %vm185_vm1, %v1944_v41, %v992_v58  ;;  %v1591_v41 = vpack.c.bf16 %v1212_v13, %v1211_v42 }
 0x802   :  { %v1013_v6 = vsel %vm271_vm5, %v1011_v62, %v998_v61 }
 0x803   :  { %1483 = vmatprep.mubr.msk.f32.mxu0 %vm271_vm5, %v898_v50 }
 0x804   :  { %1484 = vmatmul.mubr.msk.f32.vlgmr.msra.gmra.mrb[6].mxu0 %vm271_vm5, %v899_v51  ;;  %v1000_v60 = vpop.permute.xlu1 %999 }
 0x805   :  { %1578 = vmatpush3.bf16.msra.mxu0 %v1575_v14  ;;  %v1014_v8 = vsel %vm271_vm5, %v1012_v4, %v1000_v60 }
 0x806   :  { %1580 = vmatprep.subr.bf16.mxu0 %v1579_v52 }
 0x809   :  { %1582 = vmatpush3.bf16.msra.mxu0 %v1579_v52 }
 0x80a   :  { %1592 = vmatprep.subr.bf16.mxu0 %v1591_v41 }
 0x8d7   :  { %v1485_v56 = vpop.f32.mrb[6].mxu0 }
 0x8d8   :  { %1007 = vrot.lane.b32.xlu1 %v1485_v56, %s1797_s26  ;;  %v978_v57 = vpop.f32.mrb[7].mxu0 }
 0x8d9   :  { %1005 = vrot.lane.b32.xlu0 %v978_v57, %s1797_s26 }
 0x8dc   :  { %1220 = vrot.lane.b32.xlu1 %v1354_v28, %s1787_s14 }
 0x8dd   :  { %1035 = vrot.lane.b32.xlu0 %v1868_v9, %s1794_s21  ;;  %v1121_v9 = vld [vmem:[#allocation5 + $0x30] sm:$0xff] }
 0x8de   :  { %v1587_v16 = vpack.c.bf16 %v1122_v15, %v1121_v9 }
 0x8e0   :  { %1588 = vmatprep.subr.bf16.mxu1 %v1587_v16 }
 0x8e1   :  { %1590 = vmatpush3.bf16.msra.mxu1 %v1587_v16 }
 0x94a   :  { %v1008_v63 = vpop.permute.xlu1 %1007 }
 0x94b   :  { %v1006_v7 = vpop.permute.xlu0 %1005  ;;  %v1017_v12 = vsel %vm1015_vm6, %v1014_v8, %v1008_v63 }
 0x94c   :  { %v1016_v10 = vsel %vm1015_vm6, %v1013_v6, %v1006_v7 }
 0x94d   :  { %1494 = vmatprep.mubr.msk.f32.mxu0 %vm54_vm0, %v1016_v10 }
 0x94e   :  { %1495 = vmatmul.mubr.msk.f32.vlgmr.msra.gmra.mrb[8].mxu0 %vm54_vm0, %v1017_v12  ;;  %v1221_v34 = vpop.permute.xlu1 %1220 }
 0x94f   :  { %1594 = vmatpush3.bf16.msra.mxu0 %v1591_v41  ;;  %v1036_v23 = vpop.permute.xlu0 %1035 }
 0x950   :  { %1596 = vmatprep.subr.bf16.mxu0 %v1595_v19 }
 0x953   :  { %1598 = vmatpush3.bf16.msra.mxu0 %v1595_v19 }
 0x954   :  { %1600 = vmatprep.subr.bf16.mxu0 %v1599_v22 }
 0x957   :  { %1602 = vmatpush3.bf16.msra.mxu0 %v1599_v22 }
 0x958   :  { %1604 = vmatprep.subr.bf16.mxu0 %v1603_v30 }
 0x95b   :  { %1606 = vmatpush3.bf16.msra.mxu0 %v1603_v30 }
 0xa21   :  { %v1496_v24 = vpop.f32.mrb[8].mxu0 }
 0xa22   :  { %v1110_v25 = vpop.f32.mrb[9].mxu0  ;;  %v1116_v27 = vadd.f32 %v1496_v24, %v1036_v23 }
 0xa23   :  { %v1111_v26 = vadd.f32 %v1110_v25, %v1036_v23 }
 0xa25   :  { %1505 = vmatprep.mubr.msk.f32.mxu1 %vm54_vm0, %v1111_v26 }
 0xa26   :  { %1506 = vmatmul.mubr.msk.f32.vlgmr.msra.gmra.mrb[10].mxu1 %vm54_vm0, %v1116_v27 }
 0xaf9   :  { %v1507_v31 = vpop.f32.mrb[10].mxu1 }
 0xafa   :  { %v1206_v32 = vadd.f32 %v1507_v31, %v1354_v28  ;;  %v1200_v35 = vpop.f32.mrb[11].mxu1 }
 0xafb   :  { %v1201_v33 = vadd.f32 %v1354_v28, %v1200_v35 }
 0xafc   :  { %v1210_v37 = vmax.f32 %v1206_v32, 0.0 }
 0xafd   :  { %v1209_v36 = vmax.f32 %v1201_v33, 0.0 }
 0xaff   :  { %1524 = vmatprep.mubr.msk.f32.mxu0 %vm1223_vm7, %v1209_v36 }
 0xb00   :  { %1525 = vmatmul.mubr.msk.f32.vlgmr.msra.gmra.mrb[10].mxu0 %vm1223_vm7, %v1210_v37 }
 0xbd3   :  { %v1526_v38 = vpop.f32.mrb[10].mxu0 }
 0xbd4   :  { %v1302_v39 = vadd.f32 %v1526_v38, %v1221_v34  ;;  %v1296_v0 = vpop.f32.mrb[11].mxu0 }
 0xbd5   :  { %v1297_v1 = vadd.f32 %v1296_v0, %v1221_v34 }
 0xbd6   :  { %1306 = vst.msk [vmem:[#allocation7 + $0x8] sm:$0xff] %vm54_vm0, %v1302_v39 }
 0xbd7   :  { %1305 = vst.msk [vmem:[#allocation7] sm:$0xff] %vm54_vm0, %v1297_v1 }
 0xbd8   :  { %1763 = shalt.err (!%p1760_p6)
}
 0xbd9   :  { %s1764_s6 = scalar_lea.hbm %s2030_s3, 256 }
 0xbda   :  { %p1765_p7 = scmp.ne.s32.totalorder %s2030_s3, %s1764_s6  ;;  %p1768_p8 = scmp.lt.u32.totalorder %s1764_s6, %s2030_s3 }
 0xbdc   :  { %p1770_p9 = pnand %p1768_p8, %p1765_p7 }
 0xbde   :  { %1773 = shalt.err (!%p1770_p9)
}
 0xbdf   :  { %1318 = dma.vmem_to_hbm [thread:$0]  %s1313_s30, 256, %s2030_s3, [#allocation4], %s1781_s22, %s1781_s22, %s1782_s23  }
 0xbe0   :  { %1778 = dma.done.wait [#allocation4], 256  }
 0xbe1   :  { %1779 = vsyncadd [#allocation4], 4294967040 }
 0xbe2   :  { %1322 = vsyncpa [#allocation3], 1 }
 0xbe3   :  { %1323 = vsyncpa [#allocation6], 1 }
 0xbe4   :  { %1324 = vsyncpa [#allocation4], 1 }

</bundles_post_ra>
